<compile_context>
chip_gen: v6e
topology: v6e:2x2x1
jax: 0.10.0
libtpu: 0.0.40
codegen_flags: <defaults>
</compile_context>

<pallas_src>
import math
import functools

import jax
import jax.numpy as jnp
from jax import lax
from jax.experimental import pallas as pl
from jax.experimental.pallas import tpu as pltpu


def _pe_kernel(seed_ref, x_ref, pe_ref, o_ref, *, p, training, block_s, batch, dm):
    """out = dropout(x + pe), pe broadcast over the batch (sublane) axis."""
    x = x_ref[...]                                   # (TS, B, D)
    pe = pe_ref[...]                                 # (TS, 1, D)
    y = x.astype(jnp.float32) + pe.astype(jnp.float32)   # broadcasts over B

    if training and p > 0.0:
        # Counter-based dropout mask: hash(global element index, seed) on the
        # VPU (int ops only -> lowers everywhere, no pltpu PRNG needed).
        i = pl.program_id(0)
        s_idx = lax.broadcasted_iota(jnp.int32, y.shape, 0) + i * block_s
        b_idx = lax.broadcasted_iota(jnp.int32, y.shape, 1)
        d_idx = lax.broadcasted_iota(jnp.int32, y.shape, 2)
        flat = (s_idx * batch + b_idx) * dm + d_idx          # global element id
        # Mix the per-call seed in before the finalizer (no tile-offset
        # aliasing between adjacent seeds for any realistic tensor size).
        flat = flat + seed_ref[0] * jnp.int32(-1640531527)   # 0x9E3779B9
        u = lax.bitcast_convert_type(flat, jnp.uint32)
        u = u ^ (u >> jnp.uint32(16))
        u = u * jnp.uint32(0x7FEB352D)
        u = u ^ (u >> jnp.uint32(15))
        u = u * jnp.uint32(0x846CA68B)
        u = u ^ (u >> jnp.uint32(16))
        # Top-24 bits -> int32 in [0, 2^24); drop iff below p * 2^24.
        r = lax.bitcast_convert_type(u >> jnp.uint32(8), jnp.int32)
        thresh = min(int(round(p * float(1 << 24))), (1 << 24) - 1)
        keep = r >= jnp.int32(thresh)
        inv_keep = jnp.float32(1.0 / (1.0 - p))              # exact f32 scale
        y = jnp.where(keep, y * inv_keep, jnp.float32(0.0))

    o_ref[...] = y.astype(o_ref.dtype)


def make_positional_encoding_table(d_model, max_len=5000, dtype=jnp.float32):
    """Deterministic buffer identical to the PyTorch __init__ ('pe').

    Pre-cast to the model dtype so the wrapper never needs a slice/cast pass.
    """
    position = jnp.arange(max_len, dtype=jnp.float32)[:, None]            # (L, 1)
    div_term = jnp.exp(
        jnp.arange(0, d_model, 2, dtype=jnp.float32)
        * (-math.log(10000.0) / d_model))                                 # (D/2,)
    pe = jnp.zeros((max_len, d_model), dtype=jnp.float32)
    pe = pe.at[:, 0::2].set(jnp.sin(position * div_term))
    pe = pe.at[:, 1::2].set(jnp.cos(position * div_term))
    return pe[:, None, :].astype(dtype)                                   # (L, 1, D)


def _chip_budget():
    """(target bytes of x per tile, total VMEM cap for this kernel)."""
    kind = ""
    try:
        kind = getattr(jax.devices()[0], "device_kind", "").lower()
    except Exception:
        pass
    if "v7" in kind:
        # 64 MiB physical VMEM: smaller tiles, keep total well under budget.
        return 8 << 20, 52 << 20
    if "v5 lite" in kind or "v5e" in kind or "v5litepod" in kind:
        # 128 MiB physical, ~820 GB/s: 12 MiB tiles are plenty.
        return 12 << 20, 100 << 20
    # v6e / default (128 MiB physical VMEM).
    return 16 << 20, 100 << 20


def _plan(S, B, D, x_dtype, pe_dtype, training):
    """Pick the S-tile and an explicit vmem_limit, counting layout padding."""
    itemsize = jnp.dtype(x_dtype).itemsize
    pe_item = jnp.dtype(pe_dtype).itemsize
    sub = {4: 8, 2: 16, 1: 32}.get(itemsize, 8)
    sub_pe = {4: 8, 2: 16, 1: 32}.get(pe_item, 8)
    b_pad = -(-B // sub) * sub            # minor dims tile to (sublane, 128)
    d_pad = -(-D // 128) * 128

    target_bytes, vmem_cap = _chip_budget()

    row_x = b_pad * d_pad * itemsize                      # padded x bytes per S-row
    per_row = 4 * row_x                                   # x in + out, double-buffered
    per_row += 2 * sub_pe * d_pad * pe_item               # pe block, double-buffered
    if training:
        per_row += 8 * b_pad * d_pad                      # u32 hash bits + f32 temp
    elif itemsize < 4:
        per_row += 4 * b_pad * d_pad                      # f32 intermediate

    ts = max(1, target_bytes // row_x)
    ts = min(ts, max(1, int(vmem_cap // int(per_row * 1.35))))
    ts = min(ts, S)
    # Keep >= ~4 grid steps on non-trivial S so both v7x TensorCores stream.
    if S > 8:
        ts = min(ts, max(8, -(-S // 4)))
    # Balance tile sizes across the grid; keep rows a multiple of 8 when possible.
    n_tiles = -(-S // ts)
    ts = -(-S // n_tiles)
    if ts > 8:
        ts = -(-ts // 8) * 8
    ts = min(ts, S)

    needed = ts * per_row + (1 << 20)
    vmem_limit = int(min(max(int(needed * 1.2), 32 << 20), vmem_cap))
    return ts, vmem_limit


def positional_encoding(x, pe_table, *, p=0.1, training=False, seed=0):
    """x: (S, B, D).  Returns dropout(x + pe[:S]) with the same shape/dtype."""
    assert 0.0 <= p < 1.0, "dropout p must be in [0, 1)"
    S, B, D = x.shape
    assert S <= pe_table.shape[0], "seq_len exceeds positional-encoding max_len"
    itemsize = jnp.dtype(x.dtype).itemsize
    pe_item = jnp.dtype(pe_table.dtype).itemsize

    seed_arr = jnp.asarray([seed], dtype=jnp.int32)

    ts, vmem_limit = _plan(S, B, D, x.dtype, pe_table.dtype, training)
    grid = (pl.cdiv(S, ts),)

    kernel = functools.partial(
        _pe_kernel, p=float(p), training=bool(training),
        block_s=int(ts), batch=int(B), dm=int(D))

    cost = pl.CostEstimate(
        flops=2 * S * B * D,
        transcendentals=0,
        bytes_accessed=2 * S * B * D * itemsize + S * D * pe_item,
    )

    return pl.pallas_call(
        kernel,
        out_shape=jax.ShapeDtypeStruct((S, B, D), x.dtype),
        grid=grid,
        in_specs=[
            pl.BlockSpec(memory_space=pltpu.MemorySpace.SMEM),      # seed scalar
            pl.BlockSpec((ts, B, D), lambda i: (i, 0, 0)),          # x tile
            pl.BlockSpec((ts, 1, D), lambda i: (i, 0, 0)),          # pe tile (full table passed)
        ],
        out_specs=pl.BlockSpec((ts, B, D), lambda i: (i, 0, 0)),
        compiler_params=pltpu.CompilerParams(
            dimension_semantics=("parallel",),
            vmem_limit_bytes=vmem_limit,
        ),
        cost_estimate=cost,
    )(seed_arr, x, pe_table)


if __name__ == "__main__":
    d_model = 32
    seq_len = 8
    batch = 2
    p = 0.1

    key = jax.random.PRNGKey(0)
    x = jax.random.normal(key, (seq_len, batch, d_model), dtype=jnp.float32)

    pe_table = make_positional_encoding_table(d_model, max_len=5000, dtype=jnp.float32)
    ref = x + pe_table[:seq_len]                                    # eval-mode reference

    # Eval mode (nn.Dropout is identity): y = x + pe[:S]
    y = positional_encoding(x, pe_table, p=p, training=False)
    y = jax.block_until_ready(y)
    assert y.shape == x.shape and y.dtype == x.dtype
    assert jnp.allclose(y, ref, atol=1e-6, rtol=1e-6)

    # Training mode: every element is either 0 or (x + pe) / (1 - p).
    y_tr = positional_encoding(x, pe_table, p=p, training=True, seed=123)
    y_tr = jax.block_until_ready(y_tr)
    assert y_tr.shape == x.shape and y_tr.dtype == x.dtype
    assert bool(jnp.all(jnp.isfinite(y_tr)))
    scaled = ref / (1.0 - p)
    ok = jnp.all((jnp.abs(y_tr) <= 1e-6) | (jnp.abs(y_tr - scaled) <= 1e-5))
    assert bool(ok)

    print("KERNEL_OK")
</pallas_src>

<mosaic_0001>
module attributes {stable_mosaic.version = 11 : i64} {
  func.func @_pe_kernel(%arg0: i32, %arg1: memref<1xi32, #tpu.memory_space<smem>>, %arg2: memref<8x2x32xf32, #tpu.memory_space<vmem>>, %arg3: memref<8x1x32xf32, #tpu.memory_space<vmem>>, %arg4: memref<8x2x32xf32, #tpu.memory_space<vmem>>) attributes {dimension_semantics = [#tpu.dimension_semantics<parallel>], iteration_bounds = array<i64: 1>, scalar_prefetch = 0 : i64, scratch_operands = 0 : i64, tpu.core_type = #tpu.core_type<tc>, window_params = [{transform_indices = @transform_0, window_bounds = array<i64: 1>}, {transform_indices = @transform_1, window_bounds = array<i64: 8, 2, 32>}, {transform_indices = @transform_2, window_bounds = array<i64: 8, 1, 32>}, {transform_indices = @transform_3, window_bounds = array<i64: 8, 2, 32>}]} {
    %c0 = arith.constant 0 : index
    %c0_0 = arith.constant 0 : index
    %c0_1 = arith.constant 0 : index
    %0 = vector.load %arg2[%c0, %c0_0, %c0_1] : memref<8x2x32xf32, #tpu.memory_space<vmem>>, vector<8x2x32xf32>
    %c0_2 = arith.constant 0 : index
    %c0_3 = arith.constant 0 : index
    %c0_4 = arith.constant 0 : index
    %1 = vector.load %arg3[%c0_2, %c0_3, %c0_4] : memref<8x1x32xf32, #tpu.memory_space<vmem>>, vector<8x1x32xf32>
    %2 = vector.broadcast %1 : vector<8x1x32xf32> to vector<8x2x32xf32>
    %3 = arith.addf %0, %2 : vector<8x2x32xf32>
    %c0_5 = arith.constant 0 : index
    %c0_6 = arith.constant 0 : index
    %c0_7 = arith.constant 0 : index
    %4 = vector.load %arg4[%c0_5, %c0_6, %c0_7] : memref<8x2x32xf32, #tpu.memory_space<vmem>>, vector<8x2x32xf32>
    tpu.vector_store %arg4[%c0_5, %c0_6, %c0_7], %3 {strides = array<i32>} : memref<8x2x32xf32, #tpu.memory_space<vmem>>, vector<8x2x32xf32>,
    return
  }
  func.func @transform_0(%arg0: i32) -> i32 {
    %c0_i32 = arith.constant 0 : i32
    %c0_i32_0 = arith.constant 0 : i32
    return %c0_i32 : i32
  }
  func.func @transform_1(%arg0: i32) -> (i32, i32, i32) {
    %c0_i32 = arith.constant 0 : i32
    %c0_i32_0 = arith.constant 0 : i32
    %c0_i32_1 = arith.constant 0 : i32
    return %arg0, %c0_i32, %c0_i32_0 : i32, i32, i32
  }
  func.func @transform_2(%arg0: i32) -> (i32, i32, i32) {
    %c0_i32 = arith.constant 0 : i32
    %c0_i32_0 = arith.constant 0 : i32
    %c0_i32_1 = arith.constant 0 : i32
    return %arg0, %c0_i32, %c0_i32_0 : i32, i32, i32
  }
  func.func @transform_3(%arg0: i32) -> (i32, i32, i32) {
    %c0_i32 = arith.constant 0 : i32
    %c0_i32_0 = arith.constant 0 : i32
    %c0_i32_1 = arith.constant 0 : i32
    return %arg0, %c0_i32, %c0_i32_0 : i32, i32, i32
  }
}

</mosaic_0001>

<bundles_post_ra>
// kernel: tpu_custom_call.1
= control target key start
LH: loop header
LB: loop body
LE: loop exit
PB: predicated region body
PF: predicated region fallthrough
CT: control target
= control target key end

     0   :  { %vm88_vm0 = vcmask 254976   ;;  %s228_s0 = inlined_call_operand.<no memory space> [shape: s32[1], index: 0, kind: input, shape index: {}]   ;;  %s229_s1 = inlined_call_operand.vmem [shape: f32[8,2,32], index: 1, kind: input, shape index: {}]   ;;  %s230_s2 = inlined_call_operand.vmem [shape: f32[5000,1,32], index: 2, kind: input, shape index: {}]   ;;  %s231_s3 = inlined_call_operand.hbm [shape: f32[8,2,32], index: 3, kind: output, shape index: {}]  }
   0x1   :  { %v16_v0 = vld [vmem:[%s229_s1] sm:$0x3]  ;;  %v17_v3 = vld [vmem:[%s229_s1 + $0x2] sm:$0x3]  ;;  %v18_v5 = vld [vmem:[%s229_s1 + $0x4] sm:$0x3] }
   0x2   :  { %v113_v1 = vld [vmem:[%s230_s2] ss:$0 sm:$0xff]  ;;  %v114_v4 = vld [vmem:[%s230_s2 + $0x1] ss:$0 sm:$0xff]  ;;  %v115_v7 = vld [vmem:[%s230_s2 + $0x2] ss:$0 sm:$0xff] }
   0x3   :  { %v80_v2 = vadd.f32 %v113_v1, %v16_v0  ;;  %v81_v6 = vadd.f32 %v114_v4, %v17_v3  ;;  %v19_v8 = vld [vmem:[%s229_s1 + $0x6] sm:$0x3]  ;;  %v116_v9 = vld [vmem:[%s230_s2 + $0x3] ss:$0 sm:$0xff]  ;;  %v82_v10 = vadd.f32 %v115_v7, %v18_v5  ;;  %v20_v12 = vld [vmem:[%s229_s1 + $0x8] sm:$0x3] }
   0x4   :  { %v83_v11 = vadd.f32 %v116_v9, %v19_v8  ;;  %v117_v13 = vld [vmem:[%s230_s2 + $0x4] ss:$0 sm:$0xff]  ;;  %v21_v14 = vld [vmem:[%s229_s1 + $0xa] sm:$0x3]  ;;  %v118_v16 = vld [vmem:[%s230_s2 + $0x5] ss:$0 sm:$0xff] }
   0x5   :  { %89 = vst.msk [vmem:[#allocation3] sm:$0x3] %vm88_vm0, %v80_v2  ;;  %90 = vst.msk [vmem:[#allocation3 + $0x2] sm:$0x3] %vm88_vm0, %v81_v6  ;;  %v84_v15 = vadd.f32 %v117_v13, %v20_v12  ;;  %v22_v17 = vld [vmem:[%s229_s1 + $0xc] sm:$0x3]  ;;  %v85_v19 = vadd.f32 %v118_v16, %v21_v14 }
   0x6   :  { %v119_v18 = vld [vmem:[%s230_s2 + $0x6] ss:$0 sm:$0xff]  ;;  %91 = vst.msk [vmem:[#allocation3 + $0x4] sm:$0x3] %vm88_vm0, %v82_v10  ;;  %92 = vst.msk [vmem:[#allocation3 + $0x6] sm:$0x3] %vm88_vm0, %v83_v11 }
   0x7   :  { %v86_v20 = vadd.f32 %v119_v18, %v22_v17  ;;  %v23_v21 = vld [vmem:[%s229_s1 + $0xe] sm:$0x3]  ;;  %v120_v22 = vld [vmem:[%s230_s2 + $0x7] ss:$0 sm:$0xff] }
   0x8   :  { %9 = vsyncpa [#allocation4], 0  ;;  %93 = vst.msk [vmem:[#allocation3 + $0x8] sm:$0x3] %vm88_vm0, %v84_v15  ;;  %v87_v23 = vadd.f32 %v120_v22, %v23_v21  ;;  %s146_s0 = smov [#allocation3]  }
   0x9   :  { %s102_s16 = sshll.u32 %s146_s0, 4  ;;  %94 = vst.msk [vmem:[#allocation3 + $0xa] sm:$0x3] %vm88_vm0, %v85_v19  ;;  %95 = vst.msk [vmem:[#allocation3 + $0xc] sm:$0x3] %vm88_vm0, %v86_v20  ;;  %s103_s16 = int_to_ptr.vmem [resolvable:$true] %s102_s16 }
   0xa   :  { %96 = vst.msk [vmem:[#allocation3 + $0xe] sm:$0x3] %vm88_vm0, %v87_v23  ;;  %s124_s17 = scalar_lea.vmem %s103_s16, 256  ;;  %p129_p1 = scmp.lt.s32.totalorder %s103_s16, %s103_s16 }
   0xb   :  { %p125_p0 = scmp.ne.s32.totalorder %s103_s16, %s124_s17  ;;  %p130_p2 = scmp.lt.s32.totalorder %s124_s17, %s124_s17 }
   0xd   :  { %p131_p3 = por %p130_p2, %p129_p1 }
   0xf   :  { %p132_p4 = pnand %p131_p3, %p125_p0 }
  0x11   :  { %135 = shalt.err (!%p132_p4)
}
  0x12   :  { %s147_s1 = smov 32   ;;  %s148_s2 = smov 2  }
  0x13   :  { %108 = dma.vmem_to_hbm [thread:$0]  %s103_s16, 256, %s231_s3, [#allocation4], %s147_s1, %s147_s1, %s148_s2  }
  0x14   :  { %144 = dma.done.wait [#allocation4], 256  }
  0x15   :  { %145 = vsyncadd [#allocation4], 4294967040 }
  0x16   :  { %112 = vsyncpa [#allocation4], 1 }

</bundles_post_ra>
